<compile_context>
chip_gen: v5e
topology: v5e:2x2
jax: 0.10.0
libtpu: 0.0.40
codegen_flags: <defaults>
</compile_context>

<pallas_src>
import functools

import jax
import jax.numpy as jnp
from jax.experimental import pallas as pl
from jax.experimental.pallas import tpu as pltpu

D_IN, D_H1, D_H2, D_OUT = 64, 10, 100, 64
H1P = 128    # padded hidden-1 width
H2P = 128    # padded hidden-2 width (and padded `other` width)
OUTP = 128   # padded output width (lane-dense stores)


def _round_up(n, m):
    return ((n + m - 1) // m) * m


def _mlp_kernel(x_ref, other_ref, w1_ref, b1_ref, w2_ref, b2_ref,
                w3_ref, b3_ref, o_ref):
    cdt = w1_ref.dtype                       # compute/storage dtype (bf16)
    x = x_ref[...]
    # fc1 + relu      (K=64, N=128 padded)
    h = jnp.dot(x, w1_ref[...], preferred_element_type=jnp.float32) + b1_ref[...]
    h = jnp.maximum(h, 0.0)
    # fc2 + relu      (K=128 padded, N=128 padded)
    h = jnp.dot(h.astype(cdt), w2_ref[...],
                preferred_element_type=jnp.float32) + b2_ref[...]
    h = jnp.maximum(h, 0.0)
    # + other
    h = h + other_ref[...].astype(jnp.float32)
    # fc3 + relu      (K=128 padded, N=128 padded -> lane-dense store)
    h = jnp.dot(h.astype(cdt), w3_ref[...],
                preferred_element_type=jnp.float32) + b3_ref[...]
    h = jnp.maximum(h, 0.0)
    o_ref[...] = h.astype(o_ref.dtype)


def prepare_params(params, compute_dtype=jnp.bfloat16):
    """One-time host-side prep: zero-pad every feature dim to 128 lanes and
    cast weights to the compute dtype (biases stay f32, shaped (1, N))."""
    w1, b1, w2, b2, w3, b3 = params

    def pad_w(w, kp, np_):
        k, n = w.shape
        return jnp.pad(w, ((0, kp - k), (0, np_ - n))).astype(compute_dtype)

    def pad_b(b, np_):
        b = jnp.reshape(b, (1, -1))
        return jnp.pad(b, ((0, 0), (0, np_ - b.shape[1]))).astype(jnp.float32)

    return (pad_w(w1, D_IN, H1P), pad_b(b1, H1P),
            pad_w(w2, H1P, H2P), pad_b(b2, H2P),
            pad_w(w3, H2P, OUTP), pad_b(b3, OUTP))


def mlp_forward(x, other, prepared_params, *, block_b=None,
                compute_dtype=jnp.bfloat16):
    """Fused fc1->relu->fc2->relu->add->fc3->relu Pallas kernel."""
    w1, b1, w2, b2, w3, b3 = prepared_params
    B = x.shape[0]
    out_dtype = x.dtype

    if block_b is None:
        # >=2 grid programs (v7x megacore) but large tiles for big batches.
        block_b = min(2048, max(16, _round_up(pl.cdiv(B, 2), 16)))
    tb = max(16, _round_up(block_b, 16))     # bf16 sublane packing -> mult of 16
    Bp = _round_up(B, tb)
    grid = (Bp // tb,)

    # Cast mem-bound streams to bf16; pad `other` cols and any batch remainder
    # with zeros (zero rows/cols flow harmlessly through relu/matmul and are
    # sliced away below).
    xc = x.astype(compute_dtype)
    oc = other.astype(compute_dtype)
    oc = jnp.pad(oc, ((0, Bp - B), (0, H2P - other.shape[1])))
    if Bp != B:
        xc = jnp.pad(xc, ((0, Bp - B), (0, 0)))

    batch_map = lambda i: (i, 0)
    bcast_map = lambda i: (0, 0)

    out_padded = pl.pallas_call(
        _mlp_kernel,
        out_shape=jax.ShapeDtypeStruct((Bp, OUTP), out_dtype),
        grid=grid,
        in_specs=[
            pl.BlockSpec((tb, D_IN), batch_map),    # x      (tb, 64)   bf16
            pl.BlockSpec((tb, H2P), batch_map),     # other  (tb, 128)  bf16
            pl.BlockSpec((D_IN, H1P), bcast_map),   # w1     (64, 128)  bf16
            pl.BlockSpec((1, H1P), bcast_map),      # b1     (1, 128)   f32
            pl.BlockSpec((H1P, H2P), bcast_map),    # w2     (128, 128) bf16
            pl.BlockSpec((1, H2P), bcast_map),      # b2     (1, 128)   f32
            pl.BlockSpec((H2P, OUTP), bcast_map),   # w3     (128, 128) bf16
            pl.BlockSpec((1, OUTP), bcast_map),     # b3     (1, 128)   f32
        ],
        out_specs=pl.BlockSpec((tb, OUTP), batch_map),
        compiler_params=pltpu.CompilerParams(
            dimension_semantics=("parallel",),
            vmem_limit_bytes=32 * 1024 * 1024),
    )(xc, oc, w1, b1, w2, b2, w3, b3)

    # Drop padded rows / output columns (padded cols are exactly zero).
    return out_padded[:B, :D_OUT]


def init_linear(key, fan_in, fan_out, dtype=jnp.float32):
    """PyTorch nn.Linear-style init: U(-1/sqrt(fan_in), 1/sqrt(fan_in)).
    Weight returned already transposed to (fan_in, fan_out)."""
    kw, kb = jax.random.split(key)
    bound = 1.0 / jnp.sqrt(jnp.float32(fan_in))
    w = jax.random.uniform(kw, (fan_in, fan_out), dtype, -bound, bound)
    b = jax.random.uniform(kb, (1, fan_out), dtype, -bound, bound)
    return w, b


def reference_forward(x, other, params, compute_dtype=jnp.bfloat16):
    """Pure-JAX reference using the same bf16-storage / f32-accumulate math."""
    w1, b1, w2, b2, w3, b3 = params
    cd = compute_dtype
    h = jnp.dot(x.astype(cd), w1.astype(cd),
                preferred_element_type=jnp.float32) + b1.astype(jnp.float32)
    h = jnp.maximum(h, 0.0)
    h = jnp.dot(h.astype(cd), w2.astype(cd),
                preferred_element_type=jnp.float32) + b2.astype(jnp.float32)
    h = jnp.maximum(h, 0.0)
    h = h + other.astype(cd).astype(jnp.float32)
    h = jnp.dot(h.astype(cd), w3.astype(cd),
                preferred_element_type=jnp.float32) + b3.astype(jnp.float32)
    return jnp.maximum(h, 0.0)


if __name__ == "__main__":
    key = jax.random.PRNGKey(0)
    k_x, k_o, k1, k2, k3 = jax.random.split(key, 5)

    B = 128
    x = jax.random.normal(k_x, (B, D_IN), jnp.float32)
    other = jax.random.normal(k_o, (B, D_H2), jnp.float32)   # (B, 100)

    w1, b1 = init_linear(k1, D_IN, D_H1)
    w2, b2 = init_linear(k2, D_H1, D_H2)
    w3, b3 = init_linear(k3, D_H2, D_OUT)
    params = (w1, b1, w2, b2, w3, b3)

    prepared = prepare_params(params, compute_dtype=jnp.bfloat16)
    fwd = jax.jit(functools.partial(mlp_forward, compute_dtype=jnp.bfloat16))

    out = jax.block_until_ready(fwd(x, other, prepared))

    ref = reference_forward(x, other, params)
    assert out.shape == (B, D_OUT), out.shape
    max_err = float(jnp.max(jnp.abs(out - ref)))
    assert max_err < 1e-3, max_err

    print("KERNEL_OK")
</pallas_src>

<mosaic_0001>
module attributes {stable_mosaic.version = 11 : i64} {
  func.func @_mlp_kernel(%arg0: i32, %arg1: memref<64x64xbf16, #tpu.memory_space<vmem>>, %arg2: memref<64x128xbf16, #tpu.memory_space<vmem>>, %arg3: memref<64x128xbf16, #tpu.memory_space<vmem>>, %arg4: memref<1x128xf32, #tpu.memory_space<vmem>>, %arg5: memref<128x128xbf16, #tpu.memory_space<vmem>>, %arg6: memref<1x128xf32, #tpu.memory_space<vmem>>, %arg7: memref<128x128xbf16, #tpu.memory_space<vmem>>, %arg8: memref<1x128xf32, #tpu.memory_space<vmem>>, %arg9: memref<64x128xf32, #tpu.memory_space<vmem>>) attributes {dimension_semantics = [#tpu.dimension_semantics<parallel>], iteration_bounds = array<i64: 2>, scalar_prefetch = 0 : i64, scratch_operands = 0 : i64, tpu.core_type = #tpu.core_type<tc>, window_params = [{transform_indices = @transform_0, window_bounds = array<i64: 64, 64>}, {transform_indices = @transform_1, window_bounds = array<i64: 64, 128>}, {pipeline_mode = #tpu.pipeline_mode<synchronous>, transform_indices = @transform_2, window_bounds = array<i64: 64, 128>}, {pipeline_mode = #tpu.pipeline_mode<synchronous>, transform_indices = @transform_3, window_bounds = array<i64: 1, 128>}, {pipeline_mode = #tpu.pipeline_mode<synchronous>, transform_indices = @transform_4, window_bounds = array<i64: 128, 128>}, {pipeline_mode = #tpu.pipeline_mode<synchronous>, transform_indices = @transform_5, window_bounds = array<i64: 1, 128>}, {pipeline_mode = #tpu.pipeline_mode<synchronous>, transform_indices = @transform_6, window_bounds = array<i64: 128, 128>}, {pipeline_mode = #tpu.pipeline_mode<synchronous>, transform_indices = @transform_7, window_bounds = array<i64: 1, 128>}, {transform_indices = @transform_8, window_bounds = array<i64: 64, 128>}]} {
    %c0 = arith.constant 0 : index
    %c0_0 = arith.constant 0 : index
    %0 = vector.load %arg1[%c0, %c0_0] : memref<64x64xbf16, #tpu.memory_space<vmem>>, vector<64x64xbf16>
    %c0_1 = arith.constant 0 : index
    %c0_2 = arith.constant 0 : index
    %1 = vector.load %arg3[%c0_1, %c0_2] : memref<64x128xbf16, #tpu.memory_space<vmem>>, vector<64x128xbf16>
    %cst = arith.constant dense<0.000000e+00> : vector<64x128xf32>
    %2 = tpu.matmul %0, %1, %cst {dimension_numbers = #tpu.dot_dimension_numbers<[1], [0], [0], [1], [0, 0, 1, 1], [], []>} : vector<64x64xbf16>, vector<64x128xbf16>, vector<64x128xf32> -> vector<64x128xf32>
    %c0_3 = arith.constant 0 : index
    %c0_4 = arith.constant 0 : index
    %3 = vector.load %arg4[%c0_3, %c0_4] : memref<1x128xf32, #tpu.memory_space<vmem>>, vector<1x128xf32>
    %4 = vector.broadcast %3 : vector<1x128xf32> to vector<64x128xf32>
    %5 = arith.addf %2, %4 : vector<64x128xf32>
    %cst_5 = arith.constant 0.000000e+00 : f32
    %6 = vector.broadcast %cst_5 : f32 to vector<64x128xf32>
    %7 = arith.maximumf %5, %6 : vector<64x128xf32>
    %8 = arith.truncf %7 : vector<64x128xf32> to vector<64x128xbf16>
    %c0_6 = arith.constant 0 : index
    %c0_7 = arith.constant 0 : index
    %9 = vector.load %arg5[%c0_6, %c0_7] : memref<128x128xbf16, #tpu.memory_space<vmem>>, vector<128x128xbf16>
    %cst_8 = arith.constant dense<0.000000e+00> : vector<64x128xf32>
    %10 = tpu.matmul %8, %9, %cst_8 {dimension_numbers = #tpu.dot_dimension_numbers<[1], [0], [0], [1], [0, 0, 1, 1], [], []>} : vector<64x128xbf16>, vector<128x128xbf16>, vector<64x128xf32> -> vector<64x128xf32>
    %c0_9 = arith.constant 0 : index
    %c0_10 = arith.constant 0 : index
    %11 = vector.load %arg6[%c0_9, %c0_10] : memref<1x128xf32, #tpu.memory_space<vmem>>, vector<1x128xf32>
    %12 = vector.broadcast %11 : vector<1x128xf32> to vector<64x128xf32>
    %13 = arith.addf %10, %12 : vector<64x128xf32>
    %cst_11 = arith.constant 0.000000e+00 : f32
    %14 = vector.broadcast %cst_11 : f32 to vector<64x128xf32>
    %15 = arith.maximumf %13, %14 : vector<64x128xf32>
    %c0_12 = arith.constant 0 : index
    %c0_13 = arith.constant 0 : index
    %16 = vector.load %arg2[%c0_12, %c0_13] : memref<64x128xbf16, #tpu.memory_space<vmem>>, vector<64x128xbf16>
    %17 = arith.extf %16 : vector<64x128xbf16> to vector<64x128xf32>
    %18 = arith.addf %15, %17 : vector<64x128xf32>
    %19 = arith.truncf %18 : vector<64x128xf32> to vector<64x128xbf16>
    %c0_14 = arith.constant 0 : index
    %c0_15 = arith.constant 0 : index
    %20 = vector.load %arg7[%c0_14, %c0_15] : memref<128x128xbf16, #tpu.memory_space<vmem>>, vector<128x128xbf16>
    %cst_16 = arith.constant dense<0.000000e+00> : vector<64x128xf32>
    %21 = tpu.matmul %19, %20, %cst_16 {dimension_numbers = #tpu.dot_dimension_numbers<[1], [0], [0], [1], [0, 0, 1, 1], [], []>} : vector<64x128xbf16>, vector<128x128xbf16>, vector<64x128xf32> -> vector<64x128xf32>
    %c0_17 = arith.constant 0 : index
    %c0_18 = arith.constant 0 : index
    %22 = vector.load %arg8[%c0_17, %c0_18] : memref<1x128xf32, #tpu.memory_space<vmem>>, vector<1x128xf32>
    %23 = vector.broadcast %22 : vector<1x128xf32> to vector<64x128xf32>
    %24 = arith.addf %21, %23 : vector<64x128xf32>
    %cst_19 = arith.constant 0.000000e+00 : f32
    %25 = vector.broadcast %cst_19 : f32 to vector<64x128xf32>
    %26 = arith.maximumf %24, %25 : vector<64x128xf32>
    %c0_20 = arith.constant 0 : index
    %c0_21 = arith.constant 0 : index
    %27 = vector.load %arg9[%c0_20, %c0_21] : memref<64x128xf32, #tpu.memory_space<vmem>>, vector<64x128xf32>
    tpu.vector_store %arg9[%c0_20, %c0_21], %26 {strides = array<i32>} : memref<64x128xf32, #tpu.memory_space<vmem>>, vector<64x128xf32>,
    return
  }
  func.func @transform_0(%arg0: i32) -> (i32, i32) {
    %c0_i32 = arith.constant 0 : i32
    %c0_i32_0 = arith.constant 0 : i32
    return %arg0, %c0_i32 : i32, i32
  }
  func.func @transform_1(%arg0: i32) -> (i32, i32) {
    %c0_i32 = arith.constant 0 : i32
    %c0_i32_0 = arith.constant 0 : i32
    return %arg0, %c0_i32 : i32, i32
  }
  func.func @transform_2(%arg0: i32) -> (i32, i32) {
    %c0_i32 = arith.constant 0 : i32
    %c0_i32_0 = arith.constant 0 : i32
    %c0_i32_1 = arith.constant 0 : i32
    return %c0_i32, %c0_i32_0 : i32, i32
  }
  func.func @transform_3(%arg0: i32) -> (i32, i32) {
    %c0_i32 = arith.constant 0 : i32
    %c0_i32_0 = arith.constant 0 : i32
    %c0_i32_1 = arith.constant 0 : i32
    return %c0_i32, %c0_i32_0 : i32, i32
  }
  func.func @transform_4(%arg0: i32) -> (i32, i32) {
    %c0_i32 = arith.constant 0 : i32
    %c0_i32_0 = arith.constant 0 : i32
    %c0_i32_1 = arith.constant 0 : i32
    return %c0_i32, %c0_i32_0 : i32, i32
  }
  func.func @transform_5(%arg0: i32) -> (i32, i32) {
    %c0_i32 = arith.constant 0 : i32
    %c0_i32_0 = arith.constant 0 : i32
    %c0_i32_1 = arith.constant 0 : i32
    return %c0_i32, %c0_i32_0 : i32, i32
  }
  func.func @transform_6(%arg0: i32) -> (i32, i32) {
    %c0_i32 = arith.constant 0 : i32
    %c0_i32_0 = arith.constant 0 : i32
    %c0_i32_1 = arith.constant 0 : i32
    return %c0_i32, %c0_i32_0 : i32, i32
  }
  func.func @transform_7(%arg0: i32) -> (i32, i32) {
    %c0_i32 = arith.constant 0 : i32
    %c0_i32_0 = arith.constant 0 : i32
    %c0_i32_1 = arith.constant 0 : i32
    return %c0_i32, %c0_i32_0 : i32, i32
  }
  func.func @transform_8(%arg0: i32) -> (i32, i32) {
    %c0_i32 = arith.constant 0 : i32
    %c0_i32_0 = arith.constant 0 : i32
    return %arg0, %c0_i32 : i32, i32
  }
}

</mosaic_0001>

<bundles_post_ra>
// kernel: mlp_forward.1
= control target key start
LH: loop header
LB: loop body
LE: loop exit
PB: predicated region body
PF: predicated region fallthrough
CT: control target
= control target key end

     0   :  { %s1000_s27 = smov 0   ;;  %s1107_s0 = inlined_call_operand.vmem [shape: bf16[128,64], index: 0, kind: input, shape index: {}]   ;;  %s1108_s1 = inlined_call_operand.vmem [shape: bf16[128,128], index: 1, kind: input, shape index: {}]   ;;  %s1109_s2 = inlined_call_operand.vmem [shape: bf16[64,128], index: 2, kind: input, shape index: {}]   ;;  %s1110_s3 = inlined_call_operand.vmem [shape: f32[1,128], index: 3, kind: input, shape index: {}]   ;;  %s1111_s4 = inlined_call_operand.vmem [shape: bf16[128,128], index: 4, kind: input, shape index: {}]   ;;  %s1112_s5 = inlined_call_operand.vmem [shape: f32[1,128], index: 5, kind: input, shape index: {}]   ;;  %s1113_s6 = inlined_call_operand.vmem [shape: bf16[128,128], index: 6, kind: input, shape index: {}]   ;;  %s1114_s7 = inlined_call_operand.vmem [shape: f32[1,128], index: 7, kind: input, shape index: {}]   ;;  %s1115_s8 = inlined_call_operand.vmem [shape: f32[128,128], index: 8, kind: output, shape index: {}]  }
   0x1 LB: > { %s764_s28 = sadd.s32 4294967295, %s953_s27   ;;  %p768_p0 = scmp.ge.s32.totalorder %s953_s27, 1  ;;  %s953_s27 = sphi %s1000_s27, %s18_s27  }
   0x2   : > { %p274_p1 = scmp.lt.s32.totalorder %s953_s27, 3 }
   0x4   : > { %p275_p2 = pnand %p768_p0, %p274_p1 }
   0x5   : > { %s769_s9 = sshll.u32 (!%p275_p2), %s764_s28, 3 }
   0x6   : > { %278 = sbr.rel (%p275_p2) target bundleno = 508 (0x1fc), region = 52  ;;  %p314_p3 = scmp.lt.s32.totalorder (!%p275_p2), %s769_s9, 15 }
   0xb   : > { %v884_v0 = vld [vmem:[%s1109_s2 + $0x18] sm:$0xff]  ;;  %v883_v1 = vld [vmem:[%s1109_s2 + $0x10] sm:$0xff]  ;;  %s1117_s9 = smov (!%p314_p3, %s769_s9), 15  ;;  %v882_v2 = vld [vmem:[%s1109_s2 + $0x8] sm:$0xff]  ;;  %vm396_vm0 = vcmask 523264  }
   0xc   : > { %413 = vmatpush.bf16.msra.mxu0 %v884_v0  ;;  %s770_s14 = sshll.u32 %s1117_s9, 2  ;;  %v881_v3 = vld [vmem:[%s1109_s2] sm:$0xff]  ;;  %v892_v6 = vld [vmem:[%s1111_s4 + $0x38] sm:$0xff]  ;;  %v891_v7 = vld [vmem:[%s1111_s4 + $0x30] sm:$0xff]  ;;  %s774_s22 = sshll.u32 %s1117_s9, 3 }
   0xd   : > { %s317_s19 = scalar_lea.vmem %s1107_s0, %s770_s14  ;;  %518 = vmatpush.bf16.msra.mxu1 %v892_v6  ;;  %920 = vmatpush.bf16.msra.mxu3 %v892_v6  ;;  %v890_v8 = vld [vmem:[%s1111_s4 + $0x28] sm:$0xff]  ;;  %v889_v9 = vld [vmem:[%s1111_s4 + $0x20] sm:$0xff]  ;;  %v888_v12 = vld [vmem:[%s1111_s4 + $0x18] sm:$0xff]  ;;  %s1091_s20 = scalar_lea.vmem %s1108_s1, %s770_s14 }
   0xe   : > { %v877_v4 = vld [vmem:[%s317_s19] sm:$0xff]  ;;  %v878_v5 = vld [vmem:[%s317_s19 + $0x8] sm:$0xff]  ;;  %v879_v10 = vld [vmem:[%s317_s19 + $0x10] sm:$0xff]  ;;  %s329_s25 = scalar_lea.vmem %s1115_s8, %s774_s22 }
   0xf   : > { %v880_v11 = vld [vmem:[%s317_s19 + $0x18] sm:$0xff]  ;;  %v887_v13 = vld [vmem:[%s1111_s4 + $0x10] sm:$0xff]  ;;  %v886_v14 = vld [vmem:[%s1111_s4 + $0x8] sm:$0xff] }
  0x10   : > { %414 = vmatpush.bf16.msra.mxu0 %v883_v1  ;;  %v885_v15 = vld [vmem:[%s1111_s4] sm:$0xff]  ;;  %v900_v31 = vld [vmem:[%s1113_s6 + $0x38] sm:$0xff]  ;;  %v899_v33 = vld [vmem:[%s1113_s6 + $0x30] sm:$0xff] }
  0x11   : > { %519 = vmatpush.bf16.msra.mxu1 %v891_v7  ;;  %921 = vmatpush.bf16.msra.mxu3 %v891_v7  ;;  %v944_v17 = vld [vmem:[%s1110_s3] ss:$0 sm:$0xff]  ;;  %v898_v34 = vld [vmem:[%s1113_s6 + $0x28] sm:$0xff]  ;;  %v896_v49 = vld [vmem:[%s1113_s6 + $0x18] sm:$0xff] }
  0x12   : > { %928 = vmatpush.bf16.msra.mxu2 %v900_v31  ;;  %v897_v38 = vld [vmem:[%s1113_s6 + $0x20] sm:$0xff]  ;;  %v895_v50 = vld [vmem:[%s1113_s6 + $0x10] sm:$0xff]  ;;  %v894_v51 = vld [vmem:[%s1113_s6 + $0x8] sm:$0xff] }
  0x13   : > { %v893_v52 = vld [vmem:[%s1113_s6] sm:$0xff] }
  0x14   : > { %415 = vmatpush.bf16.msra.mxu0 %v882_v2  ;;  %v945_v54 = vld [vmem:[%s1112_s5] ss:$0 sm:$0xff] }
  0x15   : > { %520 = vmatpush.bf16.msra.mxu1 %v890_v8  ;;  %922 = vmatpush.bf16.msra.mxu3 %v890_v8  ;;  %v902_v56 = vld [vmem:[%s1091_s20] sm:$0xff]  }
  0x16   : > { %929 = vmatpush.bf16.msra.mxu2 %v899_v33  ;;  %v903_v59 = vunpack.c.l.bf16 %v902_v56  ;;  %v904_v61 = vunpack.c.h.bf16 %v902_v56 }
  0x18   : > { %416 = vmatpush.bf16.msra.mxu0 %v881_v3 }
  0x19   : > { %521 = vmatpush.bf16.msra.mxu1 %v889_v9  ;;  %923 = vmatpush.bf16.msra.mxu3 %v889_v9 }
  0x1a   : > { %930 = vmatpush.bf16.msra.mxu2 %v898_v34 }
  0x1b   : > { %807 = vmatmul.msk.bf16.vlgmr.msra.gmra.mxu0 %vm396_vm0, %v877_v4  ;;  %v917_v4 = vld [vmem:[%s1091_s20 + $0x8] sm:$0xff]  }
  0x1c   : > { %v907_v7 = vunpack.c.l.bf16 %v917_v4  ;;  %v908_v9 = vunpack.c.h.bf16 %v917_v4 }
  0x1d   : > { %522 = vmatpush.bf16.msra.mxu1 %v888_v12  ;;  %924 = vmatpush.bf16.msra.mxu3 %v888_v12 }
  0x1e   : > { %931 = vmatpush.bf16.msra.mxu2 %v897_v38 }
  0x21   : > { %523 = vmatpush.bf16.msra.mxu1 %v887_v13  ;;  %925 = vmatpush.bf16.msra.mxu3 %v887_v13 }
  0x22   : > { %932 = vmatpush.bf16.msra.mxu2 %v896_v49 }
  0x25   : > { %524 = vmatpush.bf16.msra.mxu1 %v886_v14  ;;  %926 = vmatpush.bf16.msra.mxu3 %v886_v14 }
  0x26   : > { %933 = vmatpush.bf16.msra.mxu2 %v895_v50 }
  0x29   : > { %525 = vmatpush.bf16.msra.mxu1 %v885_v15  ;;  %927 = vmatpush.bf16.msra.mxu3 %v885_v15 }
  0x2a   : > { %934 = vmatpush.bf16.msra.mxu2 %v894_v51 }
  0x2b   : > { %808 = vmatmul.msk.bf16.gmra.mxu0 %vm396_vm0, %v878_v5 }
  0x2d   : > { %651 = vmatpush.bf16.msrb.mxu1 %v900_v31 }
  0x2e   : > { %935 = vmatpush.bf16.msra.mxu2 %v893_v52 }
  0x31   : > { %652 = vmatpush.bf16.msrb.mxu1 %v899_v33 }
  0x35   : > { %653 = vmatpush.bf16.msrb.mxu1 %v898_v34 }
  0x39   : > { %654 = vmatpush.bf16.msrb.mxu1 %v897_v38  ;;  %v946_v38 = vld [vmem:[%s1114_s7] ss:$0 sm:$0xff] }
  0x3b   : > { %809 = vmatmul.msk.bf16.gmra.mxu0 %vm396_vm0, %v879_v10 }
  0x3d   : > { %655 = vmatpush.bf16.msrb.mxu1 %v896_v49 }
  0x41   : > { %656 = vmatpush.bf16.msrb.mxu1 %v895_v50 }
  0x45   : > { %657 = vmatpush.bf16.msrb.mxu1 %v894_v51 }
  0x49   : > { %658 = vmatpush.bf16.msrb.mxu1 %v893_v52 }
  0x4b   : > { %810 = vmatmul.msk.bf16.gmra.mxu0 %vm396_vm0, %v880_v11 }
  0x98   : > { %v418_v16 = vpop.f32.mrf.mxu0 }
  0x99   : > { %v419_v18 = vadd.f32 %v944_v17, %v418_v16  ;;  %v918_v16 = vld [vmem:[%s1091_s20 + $0x10] sm:$0xff]  }
  0x9b   : > { %v438_v21 = vmax.f32 %v419_v18, 0.0 }
  0xa0   : > { %v420_v19 = vpop.f32.mrf.mxu0 }
  0xa1   : > { %v421_v20 = vadd.f32 %v944_v17, %v420_v19  ;;  %v911_v19 = vunpack.c.l.bf16 %v918_v16 }
  0xa3   : > { %v439_v22 = vmax.f32 %v421_v20, 0.0 }
  0xa5   : > { %v446_v23 = vpack.c.bf16 %v439_v22, %v438_v21  ;;  %v912_v21 = vunpack.c.h.bf16 %v918_v16 }
  0xa7   : > { %526 = vmatmul.bf16.vlgmr.msra.gmra.mxu1 %v446_v23 }
  0xa8   : > { %v423_v24 = vpop.f32.mrf.mxu0 }
  0xa9   : > { %v424_v25 = vadd.f32 %v944_v17, %v423_v24 }
  0xab   : > { %v440_v28 = vmax.f32 %v424_v25, 0.0 }
  0xb0   : > { %v425_v26 = vpop.f32.mrf.mxu0 }
  0xb1   : > { %v426_v27 = vadd.f32 %v944_v17, %v425_v26 }
  0xb3   : > { %v441_v29 = vmax.f32 %v426_v27, 0.0 }
  0xb5   : > { %v447_v30 = vpack.c.bf16 %v441_v29, %v440_v28  ;;  %v919_v28 = vld [vmem:[%s1091_s20 + $0x18] sm:$0xff]  }
  0xb6   : > { %v915_v31 = vunpack.c.l.bf16 %v919_v28  ;;  %v916_v33 = vunpack.c.h.bf16 %v919_v28 }
  0xb7   : > { %531 = vmatmul.bf16.vlgmr.msra.gmra.mxu3 %v447_v30 }
  0xb8   : > { %v428_v32 = vpop.f32.mrf.mxu0 }
  0xb9   : > { %v429_v35 = vadd.f32 %v944_v17, %v428_v32 }
  0xbb   : > { %v442_v39 = vmax.f32 %v429_v35, 0.0 }
  0xc0   : > { %v430_v36 = vpop.f32.mrf.mxu0 }
  0xc1   : > { %v431_v37 = vadd.f32 %v944_v17, %v430_v36 }
  0xc3   : > { %v443_v40 = vmax.f32 %v431_v37, 0.0 }
  0xc5   : > { %v448_v41 = vpack.c.bf16 %v443_v40, %v442_v39 }
  0xc7   : > { %536 = vmatmul.bf16.gmra.mxu3 %v448_v41 }
  0xc8   : > { %v433_v42 = vpop.f32.mrf.mxu0 }
  0xc9   : > { %v434_v43 = vadd.f32 %v944_v17, %v433_v42 }
  0xcb   : > { %v444_v46 = vmax.f32 %v434_v43, 0.0 }
  0xd0   : > { %v435_v44 = vpop.f32.mrf.mxu0 }
  0xd1   : > { %v436_v45 = vadd.f32 %v944_v17, %v435_v44 }
  0xd3   : > { %v445_v47 = vmax.f32 %v436_v45, 0.0 }
  0xd5   : > { %v449_v48 = vpack.c.bf16 %v445_v47, %v444_v46 }
  0xd7   : > { %541 = vmatmul.bf16.gmra.mxu3 %v449_v48 }
 0x124   : > { %v527_v53 = vpop.f32.mrf.mxu1 }
 0x125   : > { %v528_v55 = vadd.f32 %v945_v54, %v527_v53 }
 0x127   : > { %v547_v58 = vmax.f32 %v528_v55, 0.0 }
 0x129   : > { %v571_v63 = vadd.f32 %v903_v59, %v547_v58 }
 0x12c   : > { %v529_v57 = vpop.f32.mrf.mxu1 }
 0x12d   : > { %v530_v60 = vadd.f32 %v945_v54, %v529_v57 }
 0x12f   : > { %v548_v62 = vmax.f32 %v530_v60, 0.0 }
 0x131   : > { %v572_v0 = vadd.f32 %v904_v61, %v548_v62 }
 0x133   : > { %v579_v1 = vpack.c.bf16 %v572_v0, %v571_v63 }
 0x135   : > { %659 = vmatmul.bf16.vlgmr.msrb.gmra.mxu1 %v579_v1 }
 0x13a   : > { %v532_v2 = vpop.f32.mrf.mxu3 }
 0x13b   : > { %v533_v3 = vadd.f32 %v945_v54, %v532_v2 }
 0x13d   : > { %v549_v6 = vmax.f32 %v533_v3, 0.0 }
 0x13f   : > { %v573_v11 = vadd.f32 %v907_v7, %v549_v6 }
 0x142   : > { %v534_v5 = vpop.f32.mrf.mxu3 }
 0x143   : > { %v535_v8 = vadd.f32 %v945_v54, %v534_v5 }
 0x145   : > { %v550_v10 = vmax.f32 %v535_v8, 0.0 }
 0x147   : > { %v574_v12 = vadd.f32 %v908_v9, %v550_v10 }
 0x149   : > { %v580_v13 = vpack.c.bf16 %v574_v12, %v573_v11 }
 0x14a   : > { %v537_v14 = vpop.f32.mrf.mxu3 }
 0x14b   : > { %664 = vmatmul.bf16.vlgmr.msra.gmra.mxu2 %v580_v13  ;;  %v538_v15 = vadd.f32 %v945_v54, %v537_v14 }
 0x14d   : > { %v551_v18 = vmax.f32 %v538_v15, 0.0 }
 0x14f   : > { %v575_v23 = vadd.f32 %v911_v19, %v551_v18 }
 0x152   : > { %v539_v17 = vpop.f32.mrf.mxu3 }
 0x153   : > { %v540_v20 = vadd.f32 %v945_v54, %v539_v17 }
 0x155   : > { %v552_v22 = vmax.f32 %v540_v20, 0.0 }
 0x157   : > { %v576_v24 = vadd.f32 %v912_v21, %v552_v22 }
 0x159   : > { %v581_v25 = vpack.c.bf16 %v576_v24, %v575_v23 }
 0x15a   : > { %v542_v26 = vpop.f32.mrf.mxu3 }
 0x15b   : > { %669 = vmatmul.bf16.gmra.mxu2 %v581_v25  ;;  %v543_v27 = vadd.f32 %v945_v54, %v542_v26 }
 0x15d   : > { %v553_v30 = vmax.f32 %v543_v27, 0.0 }
 0x15f   : > { %v577_v35 = vadd.f32 %v915_v31, %v553_v30 }
 0x162   : > { %v544_v29 = vpop.f32.mrf.mxu3 }
 0x163   : > { %v545_v32 = vadd.f32 %v945_v54, %v544_v29 }
 0x165   : > { %v554_v34 = vmax.f32 %v545_v32, 0.0 }
 0x167   : > { %v578_v36 = vadd.f32 %v916_v33, %v554_v34 }
 0x169   : > { %v582_v37 = vpack.c.bf16 %v578_v36, %v577_v35 }
 0x16b   : > { %674 = vmatmul.bf16.gmra.mxu2 %v582_v37 }
 0x1b2   : > { %v660_v39 = vpop.f32.mrf.mxu1 }
 0x1b3   : > { %v661_v40 = vadd.f32 %v946_v38, %v660_v39 }
 0x1b5   : > { %v680_v41 = vmax.f32 %v661_v40, 0.0 }
 0x1b7   : > { %688 = vst [vmem:[%s329_s25] sm:$0xff] %v680_v41 }
 0x1ba   : > { %v662_v42 = vpop.f32.mrf.mxu1 }
 0x1bb   : > { %v663_v43 = vadd.f32 %v946_v38, %v662_v42 }
 0x1bd   : > { %v681_v44 = vmax.f32 %v663_v43, 0.0 }
 0x1bf   : > { %689 = vst [vmem:[%s329_s25 + $0x8] sm:$0xff] %v681_v44 }
 0x1ce   : > { %v665_v45 = vpop.f32.mrf.mxu2 }
 0x1cf   : > { %v666_v46 = vadd.f32 %v946_v38, %v665_v45 }
 0x1d1   : > { %v682_v47 = vmax.f32 %v666_v46, 0.0 }
 0x1d3   : > { %690 = vst [vmem:[%s329_s25 + $0x10] sm:$0xff] %v682_v47 }
 0x1d6   : > { %v667_v48 = vpop.f32.mrf.mxu2 }
 0x1d7   : > { %v668_v49 = vadd.f32 %v946_v38, %v667_v48 }
 0x1d9   : > { %v683_v50 = vmax.f32 %v668_v49, 0.0 }
 0x1db   : > { %691 = vst [vmem:[%s329_s25 + $0x18] sm:$0xff] %v683_v50 }
 0x1de   : > { %v670_v51 = vpop.f32.mrf.mxu2 }
 0x1df   : > { %v671_v52 = vadd.f32 %v946_v38, %v670_v51 }
 0x1e1   : > { %v684_v53 = vmax.f32 %v671_v52, 0.0 }
 0x1e3   : > { %692 = vst [vmem:[%s329_s25 + $0x20] sm:$0xff] %v684_v53 }
 0x1e6   : > { %v672_v54 = vpop.f32.mrf.mxu2 }
 0x1e7   : > { %v673_v55 = vadd.f32 %v946_v38, %v672_v54 }
 0x1e9   : > { %v685_v56 = vmax.f32 %v673_v55, 0.0 }
 0x1eb   : > { %693 = vst [vmem:[%s329_s25 + $0x28] sm:$0xff] %v685_v56 }
 0x1ee   : > { %v675_v57 = vpop.f32.mrf.mxu2 }
 0x1ef   : > { %v676_v58 = vadd.f32 %v946_v38, %v675_v57 }
 0x1f1   : > { %v686_v59 = vmax.f32 %v676_v58, 0.0 }
 0x1f3   : > { %694 = vst [vmem:[%s329_s25 + $0x30] sm:$0xff] %v686_v59 }
 0x1f6   : > { %v677_v60 = vpop.f32.mrf.mxu2 }
 0x1f7   : > { %v678_v61 = vadd.f32 %v946_v38, %v677_v60 }
 0x1f9   : > { %v687_v62 = vmax.f32 %v678_v61, 0.0 }
 0x1fb   : > { %695 = vst [vmem:[%s329_s25 + $0x38] sm:$0xff] %v687_v62 }
 0x1fc PF: > { %s18_s27 = sadd.s32 1, %s953_s27  }
 0x1fd   : > { %p15_p4 = scmp.ge.s32.totalorder %s18_s27, 4  }
 0x1ff   :  { %17 = sbr.rel (!%p15_p4) target bundleno = 1 (0x1), region = 85 }

</bundles_post_ra>
